<compile_context>
chip_gen: v7x
topology: tpu7x:2x2x1
jax: 0.10.0
libtpu: 0.0.40
codegen_flags: <defaults>
</compile_context>

<pallas_src>
import functools

import jax
import jax.numpy as jnp
from jax.experimental import pallas as pl
from jax.experimental.pallas import tpu as pltpu


def _round_up(n, m):
    return ((n + m - 1) // m) * m


def _tpu_generation_info():
    """Best-effort (physical VMEM bytes, large-dim feature alignment)."""
    vmem = None
    try:
        vmem = int(pltpu.get_tpu_info().vmem_capacity_bytes)
    except Exception:
        vmem = None
    kind = ""
    try:
        kind = jax.devices()[0].device_kind.lower()
    except Exception:
        pass
    is_v5_or_older = ("v5" in kind) or ("v4" in kind) or ("v3" in kind)
    if vmem is None:
        if is_v5_or_older or "v6" in kind:
            vmem = 128 * 2**20
        else:
            vmem = 64 * 2**20          # conservative (v7x has 64 MiB per TC)
    # v5e MXU is 128x128; v6e/v7x MXUs are 256x256 -> 256-align large dims.
    large_align = 128 if is_v5_or_older else 256
    return vmem, large_align


def _align_feature(d, large_align):
    if d >= 256:
        return _round_up(d, large_align)
    return _round_up(d, 128)


def _choose_batch_tile(B, max_tb):
    """Pick (tb, b_pad): 16-aligned for tiny B, else waste-minimizing 128-mult."""
    if B < 128:
        tb = max(16, _round_up(B, 16))       # bf16 packs 16 sublanes per vreg
        return tb, tb
    max_tb = max(128, (max_tb // 128) * 128)
    best = None
    for c in (128, 256, 384, 512, 1024):
        if c > max_tb:
            continue
        b_pad = _round_up(B, c)
        nb = b_pad // c
        # minimize pad waste, prefer >=2 grid steps (megacore), then bigger tile
        key = (b_pad - B, 0 if nb >= 2 else 1, -c)
        if best is None or key < best[0]:
            best = (key, c, b_pad)
    _, tb, b_pad = best
    return tb, b_pad


def _mlp_kernel(n_layers, x_ref, *refs):
    """Fused MLP over one batch tile.

    refs = (W1_ref, b1_ref, ..., Wn_ref, bn_ref, out_ref)
    x/W are bf16 (MXU operands); biases are f32; accumulate + epilogue in f32.
    """
    out_ref = refs[-1]
    wb_refs = refs[:-1]

    h = x_ref[...]                                   # bf16 (TB, d0)
    for i in range(n_layers):
        w = wb_refs[2 * i][...]                      # bf16 (d_i, d_{i+1})
        b = wb_refs[2 * i + 1][...]                  # f32  (1,  d_{i+1})
        acc = jnp.dot(h, w, preferred_element_type=jnp.float32)
        acc = jnp.maximum(acc + b, 0.0)              # f32 bias + ReLU epilogue
        if i < n_layers - 1:
            h = acc.astype(w.dtype)                  # back to bf16 for next MXU op
        else:
            out_ref[...] = acc.astype(out_ref.dtype)


def _xla_mlp(x, weights, biases, matmul_dtype, out_dtype):
    """Plain-XLA fallback (tiny nets / weights that cannot be VMEM-resident)."""
    n = len(weights)
    h = x.astype(matmul_dtype)
    out = None
    for i, (w, b) in enumerate(zip(weights, biases)):
        acc = jnp.dot(h, w.astype(matmul_dtype),
                      preferred_element_type=jnp.float32) + b.astype(jnp.float32)
        acc = jnp.maximum(acc, 0.0)
        if i < n - 1:
            h = acc.astype(matmul_dtype)
        else:
            out = acc.astype(out_dtype)
    return out


def prepare_params(weights, biases, *, matmul_dtype=jnp.bfloat16):
    """One-time weight/bias padding + cast (hoisted out of the forward path).

    weights[i]: (d_i, d_{i+1}) stored (in, out) so the kernel computes x @ W.
    """
    vmem_bytes, large_align = _tpu_generation_info()
    dims = [weights[0].shape[0]] + [w.shape[1] for w in weights]
    dims_p = [_align_feature(d, large_align) for d in dims]

    w_pad, b_pad = [], []
    for li, (w, b) in enumerate(zip(weights, biases)):
        di, do = w.shape
        dip, dop = dims_p[li], dims_p[li + 1]
        wp = jnp.zeros((dip, dop), matmul_dtype).at[:di, :do].set(
            w.astype(matmul_dtype))
        bp = jnp.zeros((1, dop), jnp.float32).at[0, :do].set(
            b.astype(jnp.float32))
        w_pad.append(wp)
        b_pad.append(bp)

    return dict(
        weights=tuple(w_pad), biases=tuple(b_pad),
        weights_raw=tuple(weights), biases_raw=tuple(biases),
        dims=tuple(dims), dims_p=tuple(dims_p),
        matmul_dtype=matmul_dtype, vmem_bytes=int(vmem_bytes),
    )


def base_value_forward(x, params, *, block_b=512, out_dtype=None,
                       use_pallas=None):
    """x: (B, in_dim); params: output of prepare_params()."""
    weights, biases = params["weights"], params["biases"]
    dims, dims_p = params["dims"], params["dims_p"]
    matmul_dtype = params["matmul_dtype"]
    vmem_phys = params["vmem_bytes"]
    n_layers = len(weights)

    B, in_dim = x.shape
    assert in_dim == dims[0], f"expected in_dim={dims[0]}, got {in_dim}"
    out_features = dims[-1]
    if out_dtype is None:
        out_dtype = x.dtype
    itm = jnp.dtype(matmul_dtype).itemsize
    ito = jnp.dtype(out_dtype).itemsize

    # Resident (single-buffered) weight + bias VMEM footprint.
    w_bytes = sum(dims_p[i] * dims_p[i + 1] for i in range(n_layers)) * itm
    b_bytes = sum(dims_p[1:]) * 4
    vmem_cap = int(0.85 * vmem_phys)

    tiny = (B < 128 and max(dims) < 128)
    if use_pallas is None:
        use_pallas = (not tiny) and (w_bytes + b_bytes < vmem_cap - (4 << 20))
    if not use_pallas:
        # TODO(synk): add a weight-tiled (K/N-split, f32-accumulator) Pallas
        # path for nets whose resident weights exceed VMEM; XLA fallback here.
        return _xla_mlp(x, params["weights_raw"], params["biases_raw"],
                        matmul_dtype, out_dtype)

    # ---- batch tile: 128-snapped, waste-minimizing, prefers >=2 grid steps --
    tb, b_pad = _choose_batch_tile(B, min(block_b, 1024))

    def _need(tb_):
        act_in = 2 * tb_ * dims_p[0] * itm          # double-buffered input tile
        act_out = 2 * tb_ * dims_p[-1] * ito        # double-buffered output tile
        interm = 2 * tb_ * max(dims_p) * 4          # f32 intermediates in flight
        return act_in + act_out + interm + w_bytes + b_bytes

    while _need(tb) > vmem_cap and tb > 128:
        tb = max(128, tb // 2)
        b_pad = _round_up(B, tb)
    if _need(tb) > vmem_cap:                         # weights simply too large
        return _xla_mlp(x, params["weights_raw"], params["biases_raw"],
                        matmul_dtype, out_dtype)
    nb = b_pad // tb
    vmem_limit = int(min(max(2 * _need(tb), 16 * 2**20), vmem_cap))

    # ---- activations: fast path skips pad/cast when already in layout -------
    if x.shape == (b_pad, dims_p[0]) and x.dtype == matmul_dtype:
        x_p = x
    elif x.shape == (b_pad, dims_p[0]):
        x_p = x.astype(matmul_dtype)
    else:
        x_p = jnp.zeros((b_pad, dims_p[0]), matmul_dtype)
        x_p = x_p.at[:B, :in_dim].set(x.astype(matmul_dtype))

    args = [x_p]
    for wp, bp in zip(weights, biases):
        args.append(wp)
        args.append(bp)

    out_shape = jax.ShapeDtypeStruct((b_pad, dims_p[-1]), out_dtype)
    out_spec = pl.BlockSpec((tb, dims_p[-1]), lambda i: (i, 0))

    flops = 2 * b_pad * sum(dims_p[i] * dims_p[i + 1] for i in range(n_layers))
    bytes_accessed = (x_p.size * x_p.dtype.itemsize + w_bytes + b_bytes
                      + b_pad * dims_p[-1] * ito)
    cost = pl.CostEstimate(flops=flops, transcendentals=0,
                           bytes_accessed=bytes_accessed)

    kernel = functools.partial(_mlp_kernel, n_layers)

    def _build_specs(single_buffer_weights):
        specs = [pl.BlockSpec((tb, dims_p[0]), lambda i: (i, 0))]
        for li in range(n_layers):
            dip, dop = dims_p[li], dims_p[li + 1]
            if single_buffer_weights:
                # Constant index map -> weights stay resident; single-buffer
                # them so they don't pay 2x VMEM.
                specs.append(pl.BlockSpec((dip, dop), lambda i: (0, 0),
                                          pipeline_mode=pl.Buffered(1)))
                specs.append(pl.BlockSpec((1, dop), lambda i: (0, 0),
                                          pipeline_mode=pl.Buffered(1)))
            else:
                specs.append(pl.BlockSpec((dip, dop), lambda i: (0, 0)))
                specs.append(pl.BlockSpec((1, dop), lambda i: (0, 0)))
        return specs

    def _call(single_buffer_weights):
        return pl.pallas_call(
            kernel,
            grid=(nb,),
            in_specs=_build_specs(single_buffer_weights),
            out_specs=out_spec,
            out_shape=out_shape,
            compiler_params=pltpu.CompilerParams(
                dimension_semantics=("parallel",),
                vmem_limit_bytes=vmem_limit),
            cost_estimate=cost,
        )(*args)

    try:
        out_p = _call(True)
    except Exception:
        # Guarded fallback: default (double) buffering if Buffered(1) on a
        # constant-index BlockSpec is rejected by this jax/Mosaic version.
        out_p = _call(False)

    # Slice off batch + lane padding in the wrapper.
    return out_p[:B, :out_features]


def init_params(key, in_dim, hidden_dims):
    """Deterministic init matching nn.Linear's uniform(-1/sqrt(fan_in), +)."""
    if isinstance(hidden_dims, int):
        hidden_dims = [hidden_dims]
    dims = [in_dim] + list(hidden_dims)
    weights, biases = [], []
    for i in range(len(dims) - 1):
        fan_in, fan_out = dims[i], dims[i + 1]
        key, kw, kb = jax.random.split(key, 3)
        bound = 1.0 / jnp.sqrt(fan_in)
        # Stored directly as (in, out) so the kernel computes x @ W.
        w = jax.random.uniform(kw, (fan_in, fan_out), jnp.float32, -bound, bound)
        b = jax.random.uniform(kb, (fan_out,), jnp.float32, -bound, bound)
        weights.append(w)
        biases.append(b)
    return weights, biases


if __name__ == "__main__":
    key = jax.random.PRNGKey(0)
    batch, in_dim, out_dim = 8, 32, 1
    hidden_dims = [64, 32]

    kx, kp = jax.random.split(key)
    x = jax.random.normal(kx, (batch, in_dim), jnp.float32)
    weights, biases = init_params(kp, in_dim, hidden_dims)

    # One-time padding/cast of parameters (hoisted out of the forward path).
    params = prepare_params(weights, biases)

    # Force the Pallas path even though this demo net is tiny (auto dispatch
    # would route nets this small to plain XLA).
    y = base_value_forward(x, params, use_pallas=True)
    y = jax.block_until_ready(y)

    # Pure-JAX reference with the same bf16-operand / f32-accumulate recipe.
    ref = x
    for w, b in zip(weights, biases):
        acc = jnp.dot(ref.astype(jnp.bfloat16), w.astype(jnp.bfloat16),
                      preferred_element_type=jnp.float32) + b
        ref = jnp.maximum(acc, 0.0)

    assert y.shape == (batch, hidden_dims[-1])
    assert jnp.allclose(y, ref, atol=1e-2, rtol=1e-2)

    # Auto-dispatch path (tiny net -> XLA fallback) should also agree.
    y_auto = jax.block_until_ready(base_value_forward(x, params))
    assert jnp.allclose(y_auto, ref, atol=1e-2, rtol=1e-2)

    print("KERNEL_OK")
</pallas_src>

<mosaic_0001>
module attributes {stable_mosaic.version = 11 : i64} {
  func.func @_mlp_kernel(%arg0: i32, %arg1: memref<16x128xbf16, #tpu.memory_space<vmem>>, %arg2: memref<128x128xbf16, #tpu.memory_space<vmem>>, %arg3: memref<1x128xf32, #tpu.memory_space<vmem>>, %arg4: memref<128x128xbf16, #tpu.memory_space<vmem>>, %arg5: memref<1x128xf32, #tpu.memory_space<vmem>>, %arg6: memref<16x128xf32, #tpu.memory_space<vmem>>) attributes {dimension_semantics = [#tpu.dimension_semantics<parallel>], iteration_bounds = array<i64: 1>, scalar_prefetch = 0 : i64, scratch_operands = 0 : i64, tpu.core_type = #tpu.core_type<tc>, window_params = [{transform_indices = @transform_0, window_bounds = array<i64: 16, 128>}, {pipeline_mode = #tpu.pipeline_mode<synchronous>, transform_indices = @transform_1, window_bounds = array<i64: 128, 128>}, {pipeline_mode = #tpu.pipeline_mode<synchronous>, transform_indices = @transform_2, window_bounds = array<i64: 1, 128>}, {pipeline_mode = #tpu.pipeline_mode<synchronous>, transform_indices = @transform_3, window_bounds = array<i64: 128, 128>}, {pipeline_mode = #tpu.pipeline_mode<synchronous>, transform_indices = @transform_4, window_bounds = array<i64: 1, 128>}, {transform_indices = @transform_5, window_bounds = array<i64: 16, 128>}]} {
    %c0 = arith.constant 0 : index
    %c0_0 = arith.constant 0 : index
    %0 = vector.load %arg1[%c0, %c0_0] : memref<16x128xbf16, #tpu.memory_space<vmem>>, vector<16x128xbf16>
    %c0_1 = arith.constant 0 : index
    %c0_2 = arith.constant 0 : index
    %1 = vector.load %arg2[%c0_1, %c0_2] : memref<128x128xbf16, #tpu.memory_space<vmem>>, vector<128x128xbf16>
    %c0_3 = arith.constant 0 : index
    %c0_4 = arith.constant 0 : index
    %2 = vector.load %arg3[%c0_3, %c0_4] : memref<1x128xf32, #tpu.memory_space<vmem>>, vector<1x128xf32>
    %cst = arith.constant dense<0.000000e+00> : vector<16x128xf32>
    %3 = tpu.matmul %0, %1, %cst {dimension_numbers = #tpu.dot_dimension_numbers<[1], [0], [0], [1], [0, 0, 1, 1], [], []>} : vector<16x128xbf16>, vector<128x128xbf16>, vector<16x128xf32> -> vector<16x128xf32>
    %4 = vector.broadcast %2 : vector<1x128xf32> to vector<16x128xf32>
    %5 = arith.addf %3, %4 : vector<16x128xf32>
    %cst_5 = arith.constant 0.000000e+00 : f32
    %6 = vector.broadcast %cst_5 : f32 to vector<16x128xf32>
    %7 = arith.maximumf %5, %6 : vector<16x128xf32>
    %8 = arith.truncf %7 : vector<16x128xf32> to vector<16x128xbf16>
    %c0_6 = arith.constant 0 : index
    %c0_7 = arith.constant 0 : index
    %9 = vector.load %arg4[%c0_6, %c0_7] : memref<128x128xbf16, #tpu.memory_space<vmem>>, vector<128x128xbf16>
    %c0_8 = arith.constant 0 : index
    %c0_9 = arith.constant 0 : index
    %10 = vector.load %arg5[%c0_8, %c0_9] : memref<1x128xf32, #tpu.memory_space<vmem>>, vector<1x128xf32>
    %cst_10 = arith.constant dense<0.000000e+00> : vector<16x128xf32>
    %11 = tpu.matmul %8, %9, %cst_10 {dimension_numbers = #tpu.dot_dimension_numbers<[1], [0], [0], [1], [0, 0, 1, 1], [], []>} : vector<16x128xbf16>, vector<128x128xbf16>, vector<16x128xf32> -> vector<16x128xf32>
    %12 = vector.broadcast %10 : vector<1x128xf32> to vector<16x128xf32>
    %13 = arith.addf %11, %12 : vector<16x128xf32>
    %cst_11 = arith.constant 0.000000e+00 : f32
    %14 = vector.broadcast %cst_11 : f32 to vector<16x128xf32>
    %15 = arith.maximumf %13, %14 : vector<16x128xf32>
    %c0_12 = arith.constant 0 : index
    %c0_13 = arith.constant 0 : index
    %16 = vector.load %arg6[%c0_12, %c0_13] : memref<16x128xf32, #tpu.memory_space<vmem>>, vector<16x128xf32>
    tpu.vector_store %arg6[%c0_12, %c0_13], %15 {strides = array<i32>} : memref<16x128xf32, #tpu.memory_space<vmem>>, vector<16x128xf32>,
    return
  }
  func.func @transform_0(%arg0: i32) -> (i32, i32) {
    %c0_i32 = arith.constant 0 : i32
    %c0_i32_0 = arith.constant 0 : i32
    return %arg0, %c0_i32 : i32, i32
  }
  func.func @transform_1(%arg0: i32) -> (i32, i32) {
    %c0_i32 = arith.constant 0 : i32
    %c0_i32_0 = arith.constant 0 : i32
    %c0_i32_1 = arith.constant 0 : i32
    return %c0_i32, %c0_i32_0 : i32, i32
  }
  func.func @transform_2(%arg0: i32) -> (i32, i32) {
    %c0_i32 = arith.constant 0 : i32
    %c0_i32_0 = arith.constant 0 : i32
    %c0_i32_1 = arith.constant 0 : i32
    return %c0_i32, %c0_i32_0 : i32, i32
  }
  func.func @transform_3(%arg0: i32) -> (i32, i32) {
    %c0_i32 = arith.constant 0 : i32
    %c0_i32_0 = arith.constant 0 : i32
    %c0_i32_1 = arith.constant 0 : i32
    return %c0_i32, %c0_i32_0 : i32, i32
  }
  func.func @transform_4(%arg0: i32) -> (i32, i32) {
    %c0_i32 = arith.constant 0 : i32
    %c0_i32_0 = arith.constant 0 : i32
    %c0_i32_1 = arith.constant 0 : i32
    return %c0_i32, %c0_i32_0 : i32, i32
  }
  func.func @transform_5(%arg0: i32) -> (i32, i32) {
    %c0_i32 = arith.constant 0 : i32
    %c0_i32_0 = arith.constant 0 : i32
    return %arg0, %c0_i32 : i32, i32
  }
}

module attributes {stable_mosaic.version = 11 : i64} {
  func.func @_mlp_kernel(%arg0: i32, %arg1: memref<16x128xbf16, #tpu.memory_space<vmem>>, %arg2: memref<128x128xbf16, #tpu.memory_space<vmem>>, %arg3: memref<1x128xf32, #tpu.memory_space<vmem>>, %arg4: memref<128x128xbf16, #tpu.memory_space<vmem>>, %arg5: memref<1x128xf32, #tpu.memory_space<vmem>>, %arg6: memref<16x128xf32, #tpu.memory_space<vmem>>) attributes {dimension_semantics = [#tpu.dimension_semantics<parallel>], iteration_bounds = array<i64: 1>, scalar_prefetch = 0 : i64, scratch_operands = 0 : i64, tpu.core_type = #tpu.core_type<tc>, window_params = [{transform_indices = @transform_0, window_bounds = array<i64: 16, 128>}, {pipeline_mode = #tpu.pipeline_mode<synchronous>, transform_indices = @transform_1, window_bounds = array<i64: 128, 128>}, {pipeline_mode = #tpu.pipeline_mode<synchronous>, transform_indices = @transform_2, window_bounds = array<i64: 1, 128>}, {pipeline_mode = #tpu.pipeline_mode<synchronous>, transform_indices = @transform_3, window_bounds = array<i64: 128, 128>}, {pipeline_mode = #tpu.pipeline_mode<synchronous>, transform_indices = @transform_4, window_bounds = array<i64: 1, 128>}, {transform_indices = @transform_5, window_bounds = array<i64: 16, 128>}]} {
    %c0 = arith.constant 0 : index
    %c0_0 = arith.constant 0 : index
    %0 = vector.load %arg1[%c0, %c0_0] : memref<16x128xbf16, #tpu.memory_space<vmem>>, vector<16x128xbf16>
    %c0_1 = arith.constant 0 : index
    %c0_2 = arith.constant 0 : index
    %1 = vector.load %arg2[%c0_1, %c0_2] : memref<128x128xbf16, #tpu.memory_space<vmem>>, vector<128x128xbf16>
    %c0_3 = arith.constant 0 : index
    %c0_4 = arith.constant 0 : index
    %2 = vector.load %arg3[%c0_3, %c0_4] : memref<1x128xf32, #tpu.memory_space<vmem>>, vector<1x128xf32>
    %cst = arith.constant dense<0.000000e+00> : vector<16x128xf32>
    %3 = tpu.matmul %0, %1, %cst {dimension_numbers = #tpu.dot_dimension_numbers<[1], [0], [0], [1], [0, 0, 1, 1], [], []>} : vector<16x128xbf16>, vector<128x128xbf16>, vector<16x128xf32> -> vector<16x128xf32>
    %4 = vector.broadcast %2 : vector<1x128xf32> to vector<16x128xf32>
    %5 = arith.addf %3, %4 : vector<16x128xf32>
    %cst_5 = arith.constant 0.000000e+00 : f32
    %6 = vector.broadcast %cst_5 : f32 to vector<16x128xf32>
    %7 = arith.maximumf %5, %6 : vector<16x128xf32>
    %8 = arith.truncf %7 : vector<16x128xf32> to vector<16x128xbf16>
    %c0_6 = arith.constant 0 : index
    %c0_7 = arith.constant 0 : index
    %9 = vector.load %arg4[%c0_6, %c0_7] : memref<128x128xbf16, #tpu.memory_space<vmem>>, vector<128x128xbf16>
    %c0_8 = arith.constant 0 : index
    %c0_9 = arith.constant 0 : index
    %10 = vector.load %arg5[%c0_8, %c0_9] : memref<1x128xf32, #tpu.memory_space<vmem>>, vector<1x128xf32>
    %cst_10 = arith.constant dense<0.000000e+00> : vector<16x128xf32>
    %11 = tpu.matmul %8, %9, %cst_10 {dimension_numbers = #tpu.dot_dimension_numbers<[1], [0], [0], [1], [0, 0, 1, 1], [], []>} : vector<16x128xbf16>, vector<128x128xbf16>, vector<16x128xf32> -> vector<16x128xf32>
    %12 = vector.broadcast %10 : vector<1x128xf32> to vector<16x128xf32>
    %13 = arith.addf %11, %12 : vector<16x128xf32>
    %cst_11 = arith.constant 0.000000e+00 : f32
    %14 = vector.broadcast %cst_11 : f32 to vector<16x128xf32>
    %15 = arith.maximumf %13, %14 : vector<16x128xf32>
    %c0_12 = arith.constant 0 : index
    %c0_13 = arith.constant 0 : index
    %16 = vector.load %arg6[%c0_12, %c0_13] : memref<16x128xf32, #tpu.memory_space<vmem>>, vector<16x128xf32>
    tpu.vector_store %arg6[%c0_12, %c0_13], %15 {strides = array<i32>} : memref<16x128xf32, #tpu.memory_space<vmem>>, vector<16x128xf32>,
    return
  }
  func.func @transform_0(%arg0: i32) -> (i32, i32) {
    %c0_i32 = arith.constant 0 : i32
    %c0_i32_0 = arith.constant 0 : i32
    return %arg0, %c0_i32 : i32, i32
  }
  func.func @transform_1(%arg0: i32) -> (i32, i32) {
    %c0_i32 = arith.constant 0 : i32
    %c0_i32_0 = arith.constant 0 : i32
    %c0_i32_1 = arith.constant 0 : i32
    return %c0_i32, %c0_i32_0 : i32, i32
  }
  func.func @transform_2(%arg0: i32) -> (i32, i32) {
    %c0_i32 = arith.constant 0 : i32
    %c0_i32_0 = arith.constant 0 : i32
    %c0_i32_1 = arith.constant 0 : i32
    return %c0_i32, %c0_i32_0 : i32, i32
  }
  func.func @transform_3(%arg0: i32) -> (i32, i32) {
    %c0_i32 = arith.constant 0 : i32
    %c0_i32_0 = arith.constant 0 : i32
    %c0_i32_1 = arith.constant 0 : i32
    return %c0_i32, %c0_i32_0 : i32, i32
  }
  func.func @transform_4(%arg0: i32) -> (i32, i32) {
    %c0_i32 = arith.constant 0 : i32
    %c0_i32_0 = arith.constant 0 : i32
    %c0_i32_1 = arith.constant 0 : i32
    return %c0_i32, %c0_i32_0 : i32, i32
  }
  func.func @transform_5(%arg0: i32) -> (i32, i32) {
    %c0_i32 = arith.constant 0 : i32
    %c0_i32_0 = arith.constant 0 : i32
    return %arg0, %c0_i32 : i32, i32
  }
}

</mosaic_0001>

<bundles_post_ra>
// kernel: tpu_custom_call.1
= control target key start
LH: loop header
LB: loop body
LE: loop exit
PB: predicated region body
PF: predicated region fallthrough
CT: control target
= control target key end

     0   :  { %10 = vsyncpa [#allocation3], 0  ;;  %s628_s0 = inlined_call_operand.hbm [shape: bf16[16,128], index: 0, kind: input, shape index: {}]   ;;  %s629_s1 = inlined_call_operand.hbm [shape: bf16[128,128], index: 1, kind: input, shape index: {}]   ;;  %s630_s2 = inlined_call_operand.vmem [shape: f32[1,128], index: 2, kind: input, shape index: {}]   ;;  %s631_s3 = inlined_call_operand.hbm [shape: bf16[128,128], index: 3, kind: input, shape index: {}]   ;;  %s632_s4 = inlined_call_operand.vmem [shape: f32[1,128], index: 4, kind: input, shape index: {}]   ;;  %s633_s5 = inlined_call_operand.hbm [shape: f32[16,128], index: 5, kind: output, shape index: {}]  }
   0x1   :  { %11 = vsyncpa [#allocation6], 0 }
   0x2   :  { %12 = vsyncpa [#allocation4], 0  ;;  %s518_s18 = smov [#allocation5]   ;;  %s519_s20 = smov [#allocation2]  }
   0x3   :  { %s30_s19 = sshll.u32 %s518_s18, 4  ;;  %s18_s21 = sshll.u32 %s519_s20, 4  ;;  %s31_s19 = int_to_ptr.vmem [resolvable:$true] %s30_s19  ;;  %s558_s21 = int_to_ptr.vmem [resolvable:$true] %s18_s21 }
   0x4   :  { %s424_s24 = scalar_lea.hbm %s629_s1, 1024 }
   0x5   :  { %p425_p0 = scmp.ne.s32.totalorder %s629_s1, %s424_s24  ;;  %p428_p1 = scmp.lt.u32.totalorder %s424_s24, %s629_s1 }
   0x7   :  { %p430_p2 = pnand %p428_p1, %p425_p0 }
   0x9   :  { %433 = shalt.err (!%p430_p2)
}
   0xa   :  { %s434_s29 = scalar_lea.vmem %s31_s19, 1024  ;;  %p439_p4 = scmp.lt.s32.totalorder %s31_s19, %s31_s19 }
   0xb   :  { %p435_p3 = scmp.ne.s32.totalorder %s31_s19, %s434_s29  ;;  %p440_p5 = scmp.lt.s32.totalorder %s434_s29, %s434_s29 }
   0xd   :  { %p441_p6 = por %p440_p5, %p439_p4 }
   0xf   :  { %p442_p7 = pnand %p441_p6, %p435_p3 }
  0x11   :  { %445 = shalt.err (!%p442_p7)
}
  0x12   :  { %s520_s30 = smov 64   ;;  %s521_s6 = smov 4  }
  0x13   :  { %36 = dma.hbm_to_vmem [thread:$0]  %s629_s1, 1024, %s31_s19, [#allocation6], %s520_s30, %s520_s30, %s521_s6  }
  0x14   :  { %s446_s11 = scalar_lea.hbm %s628_s0, 128 }
  0x15   :  { %p447_p8 = scmp.ne.s32.totalorder %s628_s0, %s446_s11  ;;  %p450_p9 = scmp.lt.u32.totalorder %s446_s11, %s628_s0 }
  0x17   :  { %p452_p10 = pnand %p450_p9, %p447_p8 }
  0x19   :  { %455 = shalt.err (!%p452_p10)
}
  0x1a   :  { %s456_s16 = scalar_lea.vmem %s558_s21, 128  ;;  %p461_p12 = scmp.lt.s32.totalorder %s558_s21, %s558_s21 }
  0x1b   :  { %p457_p11 = scmp.ne.s32.totalorder %s558_s21, %s456_s16  ;;  %p462_p13 = scmp.lt.s32.totalorder %s456_s16, %s456_s16 }
  0x1d   :  { %p463_p0 = por %p462_p13, %p461_p12 }
  0x1f   :  { %p464_p1 = pnand %p463_p0, %p457_p11 }
  0x21   :  { %467 = shalt.err (!%p464_p1)
}
  0x22   :  { %24 = dma.hbm_to_vmem [thread:$0]  %s628_s0, 128, %s558_s21, [#allocation3], %s520_s30, %s520_s30, %s521_s6  }
  0x23   :  { %s522_s18 = smov [#allocation7]   ;;  %s468_s23 = scalar_lea.hbm %s631_s3, 1024 }
  0x24   :  { %s44_s19 = sshll.u32 %s522_s18, 4  ;;  %p469_p2 = scmp.ne.s32.totalorder %s631_s3, %s468_s23  ;;  %s45_s19 = int_to_ptr.vmem [resolvable:$true] %s44_s19 }
  0x25   :  { %p472_p3 = scmp.lt.u32.totalorder %s468_s23, %s631_s3 }
  0x27   :  { %p474_p4 = pnand %p472_p3, %p469_p2 }
  0x29   :  { %477 = shalt.err (!%p474_p4)
}
  0x2a   :  { %s478_s28 = scalar_lea.vmem %s45_s19, 1024  ;;  %p483_p6 = scmp.lt.s32.totalorder %s45_s19, %s45_s19 }
  0x2b   :  { %p479_p5 = scmp.ne.s32.totalorder %s45_s19, %s478_s28  ;;  %p484_p7 = scmp.lt.s32.totalorder %s478_s28, %s478_s28 }
  0x2d   :  { %p485_p8 = por %p484_p7, %p483_p6 }
  0x2f   :  { %p486_p9 = pnand %p485_p8, %p479_p5 }
  0x31   :  { %489 = shalt.err (!%p486_p9)
}
  0x32   :  { %50 = dma.hbm_to_vmem [thread:$0]  %s631_s3, 1024, %s45_s19, [#allocation6], %s520_s30, %s520_s30, %s521_s6  }
  0x33   :  { %512 = dma.done.wait [#allocation3], 128  }
  0x34   :  { %513 = vsyncadd [#allocation3], 4294967168 }
  0x35   :  { %514 = dma.done.wait [#allocation6], 2048  }
  0x36   :  { %515 = vsyncadd [#allocation6], 4294965248  ;;  %v523_v0 = vmov 0.0   ;;  %vm524_vm0 = vmmov 0   ;;  %v407_v1 = vld [vmem:[#allocation5] sm:$0xff]   ;;  %v408_v2 = vld [vmem:[#allocation5 + $0x8] sm:$0xff]  }
  0x37   :  { %357 = vmatprep.subr.bf16.mxu0 %v523_v0  ;;  %373 = vmatprep.mubr.msk.bf16.mxu0 %vm524_vm0, %v523_v0  ;;  %v409_v3 = vld [vmem:[#allocation5 + $0x10] sm:$0xff]   ;;  %v416_v4 = vld [vmem:[#allocation7] sm:$0xff]   ;;  %v410_v5 = vld [vmem:[#allocation5 + $0x18] sm:$0xff]   ;;  %s525_s7 = smov [#allocation8]  }
  0x38   :  { %377 = vmatprep.subr.bf16.mxu1 %v523_v0  ;;  %393 = vmatprep.mubr.msk.bf16.mxu1 %vm524_vm0, %v523_v0  ;;  %v417_v6 = vld [vmem:[#allocation7 + $0x8] sm:$0xff]   ;;  %v411_v7 = vld [vmem:[#allocation5 + $0x20] sm:$0xff]   ;;  %v418_v8 = vld [vmem:[#allocation7 + $0x10] sm:$0xff]   ;;  %s307_s8 = sshll.u32 %s525_s7, 4  ;;  %s308_s8 = int_to_ptr.vmem [resolvable:$true] %s307_s8 }
  0x39   :  { %358 = vmatpush3.bf16.msra.mxu0 %v407_v1  ;;  %378 = vmatpush3.bf16.msra.mxu1 %v416_v4  ;;  %v412_v9 = vld [vmem:[#allocation5 + $0x28] sm:$0xff]   ;;  %v419_v10 = vld [vmem:[#allocation7 + $0x18] sm:$0xff]   ;;  %v413_v11 = vld [vmem:[#allocation5 + $0x30] sm:$0xff]   ;;  %p495_p11 = scmp.lt.s32.totalorder %s308_s8, %s308_s8 }
  0x3a   :  { %359 = vmatprep.subr.bf16.mxu0 %v523_v0  ;;  %379 = vmatprep.subr.bf16.mxu1 %v523_v0  ;;  %v420_v12 = vld [vmem:[#allocation7 + $0x20] sm:$0xff]   ;;  %v414_v13 = vld [vmem:[#allocation5 + $0x38] sm:$0xff]   ;;  %v421_v14 = vld [vmem:[#allocation7 + $0x28] sm:$0xff]  }
  0x3b   :  { %v415_v15 = vld [vmem:[#allocation2] sm:$0xff]   ;;  %v422_v16 = vld [vmem:[#allocation7 + $0x30] sm:$0xff]  }
  0x3c   :  { %v423_v17 = vld [vmem:[#allocation7 + $0x38] sm:$0xff]  }
  0x3d   :  { %360 = vmatpush3.bf16.msra.mxu0 %v408_v2  ;;  %380 = vmatpush3.bf16.msra.mxu1 %v417_v6  ;;  %v320_v18 = vld [vmem:[%s630_s2] ss:$0 sm:$0xff]  ;;  %s490_s2 = scalar_lea.vmem %s308_s8, 256 }
  0x3e   :  { %361 = vmatprep.subr.bf16.mxu0 %v523_v0  ;;  %381 = vmatprep.subr.bf16.mxu1 %v523_v0  ;;  %v330_v28 = vld [vmem:[%s632_s4] ss:$0 sm:$0xff]  ;;  %p491_p10 = scmp.ne.s32.totalorder %s308_s8, %s490_s2  ;;  %p496_p12 = scmp.lt.s32.totalorder %s490_s2, %s490_s2 }
  0x40   :  { %p497_p13 = por %p496_p12, %p495_p11 }
  0x41   :  { %362 = vmatpush3.bf16.msra.mxu0 %v409_v3  ;;  %382 = vmatpush3.bf16.msra.mxu1 %v418_v8 }
  0x42   :  { %363 = vmatprep.subr.bf16.mxu0 %v523_v0  ;;  %383 = vmatprep.subr.bf16.mxu1 %v523_v0  ;;  %p498_p0 = pnand %p497_p13, %p491_p10 }
  0x45   :  { %364 = vmatpush3.bf16.msra.mxu0 %v410_v5  ;;  %384 = vmatpush3.bf16.msra.mxu1 %v419_v10 }
  0x46   :  { %365 = vmatprep.subr.bf16.mxu0 %v523_v0  ;;  %385 = vmatprep.subr.bf16.mxu1 %v523_v0 }
  0x49   :  { %366 = vmatpush3.bf16.msra.mxu0 %v411_v7  ;;  %386 = vmatpush3.bf16.msra.mxu1 %v420_v12 }
  0x4a   :  { %367 = vmatprep.subr.bf16.mxu0 %v523_v0  ;;  %387 = vmatprep.subr.bf16.mxu1 %v523_v0 }
  0x4d   :  { %368 = vmatpush3.bf16.msra.mxu0 %v412_v9  ;;  %388 = vmatpush3.bf16.msra.mxu1 %v421_v14 }
  0x4e   :  { %369 = vmatprep.subr.bf16.mxu0 %v523_v0  ;;  %389 = vmatprep.subr.bf16.mxu1 %v523_v0 }
  0x51   :  { %370 = vmatpush3.bf16.msra.mxu0 %v413_v11  ;;  %390 = vmatpush3.bf16.msra.mxu1 %v422_v16 }
  0x52   :  { %371 = vmatprep.subr.bf16.mxu0 %v523_v0  ;;  %391 = vmatprep.subr.bf16.mxu1 %v523_v0 }
  0x55   :  { %372 = vmatpush3.bf16.msra.mxu0 %v414_v13  ;;  %392 = vmatpush3.bf16.msra.mxu1 %v423_v17 }
  0x58   :  { %374 = vmatmul.mubr.bf16.vlgmr.msra.gmra.mrb[0].mxu0 %v415_v15 }
 0x12b   :  { %v176_v19 = vpop.f32.mrb[0].mxu0 }
 0x12c   :  { %v177_v20 = vadd.f32 %v320_v18, %v176_v19  ;;  %v375_v21 = vpop.f32.mrb[1].mxu0 }
 0x12d   :  { %v179_v22 = vpop.f32.mrb[2].mxu0 }
 0x12e   :  { %v180_v23 = vadd.f32 %v320_v18, %v179_v22  ;;  %v376_v24 = vpop.f32.mrb[3].mxu0  ;;  %v183_v25 = vmax.f32 %v177_v20, 0.0 }
 0x130   :  { %v184_v26 = vmax.f32 %v180_v23, 0.0 }
 0x132   :  { %v185_v27 = vpack.c.bf16 %v184_v26, %v183_v25 }
 0x134   :  { %394 = vmatmul.mubr.bf16.vlgmr.msra.gmra.mrb[0].mxu1 %v185_v27 }
 0x207   :  { %v291_v29 = vpop.f32.mrb[0].mxu1 }
 0x208   :  { %v292_v30 = vadd.f32 %v330_v28, %v291_v29  ;;  %v395_v31 = vpop.f32.mrb[1].mxu1 }
 0x209   :  { %v294_v32 = vpop.f32.mrb[2].mxu1 }
 0x20a   :  { %v298_v33 = vmax.f32 %v292_v30, 0.0  ;;  %v295_v34 = vadd.f32 %v330_v28, %v294_v32  ;;  %v396_v35 = vpop.f32.mrb[3].mxu1 }
 0x20c   :  { %300 = vst [vmem:[#allocation8] sm:$0xff] %v298_v33  ;;  %v299_v36 = vmax.f32 %v295_v34, 0.0 }
 0x20e   :  { %301 = vst [vmem:[#allocation8 + $0x8] sm:$0xff] %v299_v36 }
 0x20f   :  { %501 = shalt.err (!%p498_p0)
}
 0x210   :  { %s502_s10 = scalar_lea.hbm %s633_s5, 256 }
 0x211   :  { %p503_p1 = scmp.ne.s32.totalorder %s633_s5, %s502_s10  ;;  %p506_p2 = scmp.lt.u32.totalorder %s502_s10, %s633_s5 }
 0x213   :  { %p508_p3 = pnand %p506_p2, %p503_p1 }
 0x215   :  { %511 = shalt.err (!%p508_p3)
}
 0x216   :  { %s526_s15 = smov 128   ;;  %s527_s16 = smov 8  }
 0x217   :  { %313 = dma.vmem_to_hbm [thread:$0]  %s308_s8, 256, %s633_s5, [#allocation4], %s526_s15, %s526_s15, %s527_s16  }
 0x218   :  { %516 = dma.done.wait [#allocation4], 256  }
 0x219   :  { %517 = vsyncadd [#allocation4], 4294967040 }
 0x21a   :  { %317 = vsyncpa [#allocation3], 1 }
 0x21b   :  { %318 = vsyncpa [#allocation6], 1 }
 0x21c   :  { %319 = vsyncpa [#allocation4], 1 }

// kernel: tpu_custom_call.1
= control target key start
LH: loop header
LB: loop body
LE: loop exit
PB: predicated region body
PF: predicated region fallthrough
CT: control target
= control target key end

     0   :  { %10 = vsyncpa [#allocation3], 0  ;;  %s628_s0 = inlined_call_operand.hbm [shape: bf16[16,128], index: 0, kind: input, shape index: {}]   ;;  %s629_s1 = inlined_call_operand.hbm [shape: bf16[128,128], index: 1, kind: input, shape index: {}]   ;;  %s630_s2 = inlined_call_operand.vmem [shape: f32[1,128], index: 2, kind: input, shape index: {}]   ;;  %s631_s3 = inlined_call_operand.hbm [shape: bf16[128,128], index: 3, kind: input, shape index: {}]   ;;  %s632_s4 = inlined_call_operand.vmem [shape: f32[1,128], index: 4, kind: input, shape index: {}]   ;;  %s633_s5 = inlined_call_operand.hbm [shape: f32[16,128], index: 5, kind: output, shape index: {}]  }
   0x1   :  { %11 = vsyncpa [#allocation6], 0 }
   0x2   :  { %12 = vsyncpa [#allocation4], 0  ;;  %s518_s18 = smov [#allocation5]   ;;  %s519_s20 = smov [#allocation2]  }
   0x3   :  { %s30_s19 = sshll.u32 %s518_s18, 4  ;;  %s18_s21 = sshll.u32 %s519_s20, 4  ;;  %s31_s19 = int_to_ptr.vmem [resolvable:$true] %s30_s19  ;;  %s558_s21 = int_to_ptr.vmem [resolvable:$true] %s18_s21 }
   0x4   :  { %s424_s24 = scalar_lea.hbm %s629_s1, 1024 }
   0x5   :  { %p425_p0 = scmp.ne.s32.totalorder %s629_s1, %s424_s24  ;;  %p428_p1 = scmp.lt.u32.totalorder %s424_s24, %s629_s1 }
   0x7   :  { %p430_p2 = pnand %p428_p1, %p425_p0 }
   0x9   :  { %433 = shalt.err (!%p430_p2)
}
   0xa   :  { %s434_s29 = scalar_lea.vmem %s31_s19, 1024  ;;  %p439_p4 = scmp.lt.s32.totalorder %s31_s19, %s31_s19 }
   0xb   :  { %p435_p3 = scmp.ne.s32.totalorder %s31_s19, %s434_s29  ;;  %p440_p5 = scmp.lt.s32.totalorder %s434_s29, %s434_s29 }
   0xd   :  { %p441_p6 = por %p440_p5, %p439_p4 }
   0xf   :  { %p442_p7 = pnand %p441_p6, %p435_p3 }
  0x11   :  { %445 = shalt.err (!%p442_p7)
}
  0x12   :  { %s520_s30 = smov 64   ;;  %s521_s6 = smov 4  }
  0x13   :  { %36 = dma.hbm_to_vmem [thread:$0]  %s629_s1, 1024, %s31_s19, [#allocation6], %s520_s30, %s520_s30, %s521_s6  }
  0x14   :  { %s446_s11 = scalar_lea.hbm %s628_s0, 128 }
  0x15   :  { %p447_p8 = scmp.ne.s32.totalorder %s628_s0, %s446_s11  ;;  %p450_p9 = scmp.lt.u32.totalorder %s446_s11, %s628_s0 }
  0x17   :  { %p452_p10 = pnand %p450_p9, %p447_p8 }
  0x19   :  { %455 = shalt.err (!%p452_p10)
}
  0x1a   :  { %s456_s16 = scalar_lea.vmem %s558_s21, 128  ;;  %p461_p12 = scmp.lt.s32.totalorder %s558_s21, %s558_s21 }
  0x1b   :  { %p457_p11 = scmp.ne.s32.totalorder %s558_s21, %s456_s16  ;;  %p462_p13 = scmp.lt.s32.totalorder %s456_s16, %s456_s16 }
  0x1d   :  { %p463_p0 = por %p462_p13, %p461_p12 }
  0x1f   :  { %p464_p1 = pnand %p463_p0, %p457_p11 }
  0x21   :  { %467 = shalt.err (!%p464_p1)
}
  0x22   :  { %24 = dma.hbm_to_vmem [thread:$0]  %s628_s0, 128, %s558_s21, [#allocation3], %s520_s30, %s520_s30, %s521_s6  }
  0x23   :  { %s522_s18 = smov [#allocation7]   ;;  %s468_s23 = scalar_lea.hbm %s631_s3, 1024 }
  0x24   :  { %s44_s19 = sshll.u32 %s522_s18, 4  ;;  %p469_p2 = scmp.ne.s32.totalorder %s631_s3, %s468_s23  ;;  %s45_s19 = int_to_ptr.vmem [resolvable:$true] %s44_s19 }
  0x25   :  { %p472_p3 = scmp.lt.u32.totalorder %s468_s23, %s631_s3 }
  0x27   :  { %p474_p4 = pnand %p472_p3, %p469_p2 }
  0x29   :  { %477 = shalt.err (!%p474_p4)
}
  0x2a   :  { %s478_s28 = scalar_lea.vmem %s45_s19, 1024  ;;  %p483_p6 = scmp.lt.s32.totalorder %s45_s19, %s45_s19 }
  0x2b   :  { %p479_p5 = scmp.ne.s32.totalorder %s45_s19, %s478_s28  ;;  %p484_p7 = scmp.lt.s32.totalorder %s478_s28, %s478_s28 }
  0x2d   :  { %p485_p8 = por %p484_p7, %p483_p6 }
  0x2f   :  { %p486_p9 = pnand %p485_p8, %p479_p5 }
  0x31   :  { %489 = shalt.err (!%p486_p9)
}
  0x32   :  { %50 = dma.hbm_to_vmem [thread:$0]  %s631_s3, 1024, %s45_s19, [#allocation6], %s520_s30, %s520_s30, %s521_s6  }
  0x33   :  { %512 = dma.done.wait [#allocation3], 128  }
  0x34   :  { %513 = vsyncadd [#allocation3], 4294967168 }
  0x35   :  { %514 = dma.done.wait [#allocation6], 2048  }
  0x36   :  { %515 = vsyncadd [#allocation6], 4294965248  ;;  %v523_v0 = vmov 0.0   ;;  %vm524_vm0 = vmmov 0   ;;  %v407_v1 = vld [vmem:[#allocation5] sm:$0xff]   ;;  %v408_v2 = vld [vmem:[#allocation5 + $0x8] sm:$0xff]  }
  0x37   :  { %357 = vmatprep.subr.bf16.mxu0 %v523_v0  ;;  %373 = vmatprep.mubr.msk.bf16.mxu0 %vm524_vm0, %v523_v0  ;;  %v409_v3 = vld [vmem:[#allocation5 + $0x10] sm:$0xff]   ;;  %v416_v4 = vld [vmem:[#allocation7] sm:$0xff]   ;;  %v410_v5 = vld [vmem:[#allocation5 + $0x18] sm:$0xff]   ;;  %s525_s7 = smov [#allocation8]  }
  0x38   :  { %377 = vmatprep.subr.bf16.mxu1 %v523_v0  ;;  %393 = vmatprep.mubr.msk.bf16.mxu1 %vm524_vm0, %v523_v0  ;;  %v417_v6 = vld [vmem:[#allocation7 + $0x8] sm:$0xff]   ;;  %v411_v7 = vld [vmem:[#allocation5 + $0x20] sm:$0xff]   ;;  %v418_v8 = vld [vmem:[#allocation7 + $0x10] sm:$0xff]   ;;  %s307_s8 = sshll.u32 %s525_s7, 4  ;;  %s308_s8 = int_to_ptr.vmem [resolvable:$true] %s307_s8 }
  0x39   :  { %358 = vmatpush3.bf16.msra.mxu0 %v407_v1  ;;  %378 = vmatpush3.bf16.msra.mxu1 %v416_v4  ;;  %v412_v9 = vld [vmem:[#allocation5 + $0x28] sm:$0xff]   ;;  %v419_v10 = vld [vmem:[#allocation7 + $0x18] sm:$0xff]   ;;  %v413_v11 = vld [vmem:[#allocation5 + $0x30] sm:$0xff]   ;;  %p495_p11 = scmp.lt.s32.totalorder %s308_s8, %s308_s8 }
  0x3a   :  { %359 = vmatprep.subr.bf16.mxu0 %v523_v0  ;;  %379 = vmatprep.subr.bf16.mxu1 %v523_v0  ;;  %v420_v12 = vld [vmem:[#allocation7 + $0x20] sm:$0xff]   ;;  %v414_v13 = vld [vmem:[#allocation5 + $0x38] sm:$0xff]   ;;  %v421_v14 = vld [vmem:[#allocation7 + $0x28] sm:$0xff]  }
  0x3b   :  { %v415_v15 = vld [vmem:[#allocation2] sm:$0xff]   ;;  %v422_v16 = vld [vmem:[#allocation7 + $0x30] sm:$0xff]  }
  0x3c   :  { %v423_v17 = vld [vmem:[#allocation7 + $0x38] sm:$0xff]  }
  0x3d   :  { %360 = vmatpush3.bf16.msra.mxu0 %v408_v2  ;;  %380 = vmatpush3.bf16.msra.mxu1 %v417_v6  ;;  %v320_v18 = vld [vmem:[%s630_s2] ss:$0 sm:$0xff]  ;;  %s490_s2 = scalar_lea.vmem %s308_s8, 256 }
  0x3e   :  { %361 = vmatprep.subr.bf16.mxu0 %v523_v0  ;;  %381 = vmatprep.subr.bf16.mxu1 %v523_v0  ;;  %v330_v28 = vld [vmem:[%s632_s4] ss:$0 sm:$0xff]  ;;  %p491_p10 = scmp.ne.s32.totalorder %s308_s8, %s490_s2  ;;  %p496_p12 = scmp.lt.s32.totalorder %s490_s2, %s490_s2 }
  0x40   :  { %p497_p13 = por %p496_p12, %p495_p11 }
  0x41   :  { %362 = vmatpush3.bf16.msra.mxu0 %v409_v3  ;;  %382 = vmatpush3.bf16.msra.mxu1 %v418_v8 }
  0x42   :  { %363 = vmatprep.subr.bf16.mxu0 %v523_v0  ;;  %383 = vmatprep.subr.bf16.mxu1 %v523_v0  ;;  %p498_p0 = pnand %p497_p13, %p491_p10 }
  0x45   :  { %364 = vmatpush3.bf16.msra.mxu0 %v410_v5  ;;  %384 = vmatpush3.bf16.msra.mxu1 %v419_v10 }
  0x46   :  { %365 = vmatprep.subr.bf16.mxu0 %v523_v0  ;;  %385 = vmatprep.subr.bf16.mxu1 %v523_v0 }
  0x49   :  { %366 = vmatpush3.bf16.msra.mxu0 %v411_v7  ;;  %386 = vmatpush3.bf16.msra.mxu1 %v420_v12 }
  0x4a   :  { %367 = vmatprep.subr.bf16.mxu0 %v523_v0  ;;  %387 = vmatprep.subr.bf16.mxu1 %v523_v0 }
  0x4d   :  { %368 = vmatpush3.bf16.msra.mxu0 %v412_v9  ;;  %388 = vmatpush3.bf16.msra.mxu1 %v421_v14 }
  0x4e   :  { %369 = vmatprep.subr.bf16.mxu0 %v523_v0  ;;  %389 = vmatprep.subr.bf16.mxu1 %v523_v0 }
  0x51   :  { %370 = vmatpush3.bf16.msra.mxu0 %v413_v11  ;;  %390 = vmatpush3.bf16.msra.mxu1 %v422_v16 }
  0x52   :  { %371 = vmatprep.subr.bf16.mxu0 %v523_v0  ;;  %391 = vmatprep.subr.bf16.mxu1 %v523_v0 }
  0x55   :  { %372 = vmatpush3.bf16.msra.mxu0 %v414_v13  ;;  %392 = vmatpush3.bf16.msra.mxu1 %v423_v17 }
  0x58   :  { %374 = vmatmul.mubr.bf16.vlgmr.msra.gmra.mrb[0].mxu0 %v415_v15 }
 0x12b   :  { %v176_v19 = vpop.f32.mrb[0].mxu0 }
 0x12c   :  { %v177_v20 = vadd.f32 %v320_v18, %v176_v19  ;;  %v375_v21 = vpop.f32.mrb[1].mxu0 }
 0x12d   :  { %v179_v22 = vpop.f32.mrb[2].mxu0 }
 0x12e   :  { %v180_v23 = vadd.f32 %v320_v18, %v179_v22  ;;  %v376_v24 = vpop.f32.mrb[3].mxu0  ;;  %v183_v25 = vmax.f32 %v177_v20, 0.0 }
 0x130   :  { %v184_v26 = vmax.f32 %v180_v23, 0.0 }
 0x132   :  { %v185_v27 = vpack.c.bf16 %v184_v26, %v183_v25 }
 0x134   :  { %394 = vmatmul.mubr.bf16.vlgmr.msra.gmra.mrb[0].mxu1 %v185_v27 }
 0x207   :  { %v291_v29 = vpop.f32.mrb[0].mxu1 }
 0x208   :  { %v292_v30 = vadd.f32 %v330_v28, %v291_v29  ;;  %v395_v31 = vpop.f32.mrb[1].mxu1 }
 0x209   :  { %v294_v32 = vpop.f32.mrb[2].mxu1 }
 0x20a   :  { %v298_v33 = vmax.f32 %v292_v30, 0.0  ;;  %v295_v34 = vadd.f32 %v330_v28, %v294_v32  ;;  %v396_v35 = vpop.f32.mrb[3].mxu1 }
 0x20c   :  { %300 = vst [vmem:[#allocation8] sm:$0xff] %v298_v33  ;;  %v299_v36 = vmax.f32 %v295_v34, 0.0 }
 0x20e   :  { %301 = vst [vmem:[#allocation8 + $0x8] sm:$0xff] %v299_v36 }
 0x20f   :  { %501 = shalt.err (!%p498_p0)
}
 0x210   :  { %s502_s10 = scalar_lea.hbm %s633_s5, 256 }
 0x211   :  { %p503_p1 = scmp.ne.s32.totalorder %s633_s5, %s502_s10  ;;  %p506_p2 = scmp.lt.u32.totalorder %s502_s10, %s633_s5 }
 0x213   :  { %p508_p3 = pnand %p506_p2, %p503_p1 }
 0x215   :  { %511 = shalt.err (!%p508_p3)
}
 0x216   :  { %s526_s15 = smov 128   ;;  %s527_s16 = smov 8  }
 0x217   :  { %313 = dma.vmem_to_hbm [thread:$0]  %s308_s8, 256, %s633_s5, [#allocation4], %s526_s15, %s526_s15, %s527_s16  }
 0x218   :  { %516 = dma.done.wait [#allocation4], 256  }
 0x219   :  { %517 = vsyncadd [#allocation4], 4294967040 }
 0x21a   :  { %317 = vsyncpa [#allocation3], 1 }
 0x21b   :  { %318 = vsyncpa [#allocation6], 1 }
 0x21c   :  { %319 = vsyncpa [#allocation4], 1 }

</bundles_post_ra>
